<compile_context>
chip_gen: v7x
topology: tpu7x:2x2x1
jax: 0.10.0
libtpu: 0.0.40
codegen_flags: <defaults>
</compile_context>

<pallas_src>
from functools import partial
from typing import NamedTuple

import numpy as np

import jax
import jax.numpy as jnp
from jax.experimental import pallas as pl
from jax.experimental.pallas import tpu as pltpu


class EmbedReturn(NamedTuple):
    emb: jax.Array | None = None
    time_emb: jax.Array | None = None
    style: jax.Array | None = None


def _time_embed_kernel(x_ref, w1_ref, b1_ref, w2_ref, b2_ref, o_ref, *, mm_dtype):
    # Fused Linear -> SiLU -> Linear.  Matmul operands are cast to `mm_dtype`
    # in-kernel (no wrapper .astype launches / extra HBM round trips); MXU
    # accumulates in f32 via preferred_element_type; bias adds + SiLU stay f32.
    x = x_ref[...].astype(mm_dtype)
    h = jnp.dot(x, w1_ref[...].astype(mm_dtype), preferred_element_type=jnp.float32)
    h = h + b1_ref[...].astype(jnp.float32)
    h = h * jax.nn.sigmoid(h)  # SiLU: sigmoid goes to the EUP slot, mul to VALU
    out = jnp.dot(h.astype(mm_dtype), w2_ref[...].astype(mm_dtype),
                  preferred_element_type=jnp.float32)
    out = out + b2_ref[...].astype(jnp.float32)
    o_ref[...] = out.astype(o_ref.dtype)


def _maybe_vmem_limit(nbytes):
    # Only raise the scoped-VMEM limit when the working set (with headroom)
    # exceeds the most conservative default (16 MiB on v5e); otherwise leave it.
    need = int(nbytes * 1.25)
    return need if need > (16 << 20) else None


def time_embed_mlp(x, w1, b1, w2, b2, *, matmul_dtype=jnp.bfloat16,
                   batch_tile=1024, out_dtype=None):
    """Fused Linear -> SiLU -> Linear (the `time_embed` MLP).

    x: (B, Ct); w1: (Ct, Co); b1: (Co,); w2: (Co, Co); b2: (Co,).
    matmul_dtype: dtype fed to the MXU (bf16 default; pass jnp.float32 at call
      sites that need exact PyTorch f32 Linear fidelity).  Accumulation is f32.
    out_dtype: output dtype; defaults to x.dtype.  Pass jnp.bfloat16 to halve
      output writeback (helps v5e's single vector-store slot) if the consumer
      accepts bf16 activations.
    """
    B, Ct = x.shape
    Co = w1.shape[1]
    if out_dtype is None:
        out_dtype = x.dtype
    out_isz = np.dtype(out_dtype).itemsize
    x_isz = x.dtype.itemsize
    w1_isz = w1.dtype.itemsize
    w2_isz = w2.dtype.itemsize

    # (Co,) -> (1, Co): free metadata reshape, keeps the kernel purely 2-D.
    b1_2d = b1.reshape(1, Co)
    b2_2d = b2.reshape(1, Co)

    kernel = partial(_time_embed_kernel, mm_dtype=matmul_dtype)
    vmem = pltpu.MemorySpace.VMEM

    cost = pl.CostEstimate(
        flops=2 * B * Co * (Ct + Co),
        transcendentals=B * Co,  # the sigmoid inside SiLU
        bytes_accessed=(B * Ct * x_isz + Ct * Co * w1_isz + Co * Co * w2_isz
                        + 2 * Co * b1.dtype.itemsize + B * Co * out_isz),
    )

    if B <= batch_tile:
        # Small batch (the diffusion case, B ~ 8): one un-pipelined call with
        # whole arrays resident in VMEM — no grid, no double-buffered DMA, no
        # pipeline prologue/epilogue.  Wall time is launch + DMA latency.
        need = (B * Ct * x_isz + Ct * Co * w1_isz + Co * Co * w2_isz
                + 2 * Co * 4 + B * Co * out_isz + 2 * B * Co * 4)
        return pl.pallas_call(
            kernel,
            out_shape=jax.ShapeDtypeStruct((B, Co), out_dtype),
            in_specs=[pl.BlockSpec(memory_space=vmem)] * 5,
            out_specs=pl.BlockSpec(memory_space=vmem),
            compiler_params=pltpu.CompilerParams(
                vmem_limit_bytes=_maybe_vmem_limit(need)),
            cost_estimate=cost,
        )(x, w1, b1_2d, w2, b2_2d)

    # Large batch: grid over the batch axis only.  pl.cdiv handles the partial
    # last block (rows are independent; out-of-bounds rows are never written
    # back), so there is no jnp.pad / out[:B] slice and no extra HBM passes.
    # B > batch_tile guarantees >= 2 grid steps, so "parallel" lets v7x's
    # second TensorCore take half the batch.  Weights/biases use constant
    # block indices -> fetched once and resident across steps.
    tb = batch_tile
    need = (2 * tb * Ct * x_isz + 2 * tb * Co * out_isz          # streamed tiles (x2 buf)
            + 2 * (Ct * Co * w1_isz + Co * Co * w2_isz + 2 * Co * 4)  # resident operands
            + 2 * tb * Co * 4)                                    # f32 intermediates
    # TODO(synk): on v7x at production Co (>=1152), single-buffer the resident
    # weight specs (pipeline_mode=pl.Buffered(1)) to reclaim VMEM for larger tb.
    return pl.pallas_call(
        kernel,
        out_shape=jax.ShapeDtypeStruct((B, Co), out_dtype),
        grid=(pl.cdiv(B, tb),),
        in_specs=[
            pl.BlockSpec((tb, Ct), lambda i: (i, 0)),   # streamed batch tile
            pl.BlockSpec((Ct, Co), lambda i: (0, 0)),   # resident weight
            pl.BlockSpec((1, Co), lambda i: (0, 0)),    # resident bias
            pl.BlockSpec((Co, Co), lambda i: (0, 0)),   # resident weight
            pl.BlockSpec((1, Co), lambda i: (0, 0)),    # resident bias
        ],
        out_specs=pl.BlockSpec((tb, Co), lambda i: (i, 0)),
        compiler_params=pltpu.CompilerParams(
            dimension_semantics=("parallel",),
            vmem_limit_bytes=_maybe_vmem_limit(need)),
        cost_estimate=cost,
    )(x, w1, b1_2d, w2, b2_2d)


def time_style_seperate_embed(params, time_emb=None, cond=None,
                              matmul_dtype=jnp.bfloat16, out_dtype=None, **kwargs):
    """Forward pass matching TimeStyleSeperateEmbed.forward."""
    if time_emb is None:
        out_time_emb = None
    else:
        out_time_emb = time_embed_mlp(
            time_emb, params["w1"], params["b1"], params["w2"], params["b2"],
            matmul_dtype=matmul_dtype, out_dtype=out_dtype)
    if cond is None:
        style = None
    else:
        style = cond  # nn.Identity()
    # TODO(synk): for the real diffusion loop (B~8, same weights every step),
    # fuse this MLP into the consumer kernel (e.g. adaLN/modulation) or keep the
    # weights VMEM-resident across calls via cross-call prefetch instead of a
    # standalone pallas_call — at these sizes wall time is pure launch + DMA.
    return EmbedReturn(emb=style, time_emb=out_time_emb, style=style)


def init_params(key, time_channels, time_out_channels, dtype=jnp.float32):
    k1, k2, k3, k4 = jax.random.split(key, 4)
    # Deterministic synthetic init (Kaiming-ish scale); weights stored as (in, out).
    w1 = jax.random.normal(k1, (time_channels, time_out_channels), dtype) * (
        1.0 / jnp.sqrt(time_channels)
    )
    b1 = jax.random.normal(k2, (time_out_channels,), dtype) * 0.01
    w2 = jax.random.normal(k3, (time_out_channels, time_out_channels), dtype) * (
        1.0 / jnp.sqrt(time_out_channels)
    )
    b2 = jax.random.normal(k4, (time_out_channels,), dtype) * 0.01
    return {"w1": w1, "b1": b1, "w2": w2, "b2": b2}


def cast_params_for_matmul(params, dtype=jnp.bfloat16):
    """One-time (outside the per-step jit) weight cast so the kernel's in-kernel
    cast becomes a no-op and weight HBM->VMEM traffic halves."""
    return {"w1": params["w1"].astype(dtype), "b1": params["b1"],
            "w2": params["w2"].astype(dtype), "b2": params["b2"]}


def _reference_f32(params, time_emb):
    h = time_emb @ params["w1"].astype(jnp.float32) + params["b1"]
    h = h * jax.nn.sigmoid(h)
    return h @ params["w2"].astype(jnp.float32) + params["b2"]


def _reference_bf16(params, time_emb):
    # Same precision recipe as the kernel: bf16 matmul operands, f32 accumulate,
    # f32 bias/SiLU.
    bf = jnp.bfloat16
    h = jnp.dot(time_emb.astype(bf), params["w1"].astype(bf),
                preferred_element_type=jnp.float32) + params["b1"]
    h = h * jax.nn.sigmoid(h)
    out = jnp.dot(h.astype(bf), params["w2"].astype(bf),
                  preferred_element_type=jnp.float32) + params["b2"]
    return out


if __name__ == "__main__":
    key = jax.random.PRNGKey(0)
    kp, kt, kc, kt2 = jax.random.split(key, 4)

    time_channels = 32
    time_out_channels = 128
    params = init_params(kp, time_channels, time_out_channels)

    # --- small-batch (diffusion) path: single un-pipelined call ---
    B = 8
    time_emb = jax.random.normal(kt, (B, time_channels), jnp.float32)
    cond = jax.random.normal(kc, (B, time_out_channels), jnp.float32)

    out = time_style_seperate_embed(params, time_emb=time_emb, cond=cond)
    jax.block_until_ready(out.time_emb)
    jax.block_until_ready(out.style)

    ref_bf16 = _reference_bf16(params, time_emb)
    ref_f32 = _reference_f32(params, time_emb)
    assert jnp.allclose(out.time_emb, ref_bf16, atol=1e-3, rtol=1e-3), \
        "mismatch vs precision-matched reference"
    assert jnp.allclose(out.time_emb, ref_f32, atol=3e-2, rtol=3e-2), \
        "mismatch vs f32 reference"
    assert out.emb is out.style
    assert jnp.array_equal(out.style, cond)

    # --- weights stored in bf16 once (in-kernel cast becomes a no-op) ---
    params_bf16 = cast_params_for_matmul(params, jnp.bfloat16)
    out_bf16w = time_style_seperate_embed(params_bf16, time_emb=time_emb, cond=cond)
    jax.block_until_ready(out_bf16w.time_emb)
    assert jnp.allclose(out_bf16w.time_emb, ref_bf16, atol=1e-3, rtol=1e-3)

    # --- None branches (identity / passthrough semantics) ---
    out_none = time_style_seperate_embed(params, time_emb=None, cond=cond)
    assert out_none.time_emb is None and jnp.array_equal(out_none.style, cond)
    out_none2 = time_style_seperate_embed(params, time_emb=time_emb, cond=None)
    assert out_none2.style is None and out_none2.emb is None

    # --- batched path: grid over batch, resident weights, partial last block ---
    Bb = 2500  # 3 blocks of 1024, last one partial -> exercises pl.cdiv masking
    big = jax.random.normal(kt2, (Bb, time_channels), jnp.float32)
    out_big = time_embed_mlp(big, params["w1"], params["b1"],
                             params["w2"], params["b2"], batch_tile=1024)
    jax.block_until_ready(out_big)
    assert out_big.shape == (Bb, time_out_channels)
    ref_big = _reference_bf16(params, big)
    assert jnp.allclose(out_big, ref_big, atol=1e-3, rtol=1e-3), \
        "batched path mismatch vs precision-matched reference"

    print("KERNEL_OK")
</pallas_src>

<mosaic_0001>
module attributes {stable_mosaic.version = 11 : i64} {
  func.func @_time_embed_kernel(%arg0: memref<8x32xf32, #tpu.memory_space<vmem>>, %arg1: memref<32x128xf32, #tpu.memory_space<vmem>>, %arg2: memref<1x128xf32, #tpu.memory_space<vmem>>, %arg3: memref<128x128xf32, #tpu.memory_space<vmem>>, %arg4: memref<1x128xf32, #tpu.memory_space<vmem>>, %arg5: memref<8x128xf32, #tpu.memory_space<vmem>>) attributes {dimension_semantics = [], scalar_prefetch = 0 : i64, scratch_operands = 0 : i64, tpu.core_type = #tpu.core_type<tc>} {
    %c0 = arith.constant 0 : index
    %c0_0 = arith.constant 0 : index
    %0 = vector.load %arg0[%c0, %c0_0] : memref<8x32xf32, #tpu.memory_space<vmem>>, vector<8x32xf32>
    %1 = arith.truncf %0 : vector<8x32xf32> to vector<8x32xbf16>
    %c0_1 = arith.constant 0 : index
    %c0_2 = arith.constant 0 : index
    %2 = vector.load %arg1[%c0_1, %c0_2] : memref<32x128xf32, #tpu.memory_space<vmem>>, vector<32x128xf32>
    %3 = arith.truncf %2 : vector<32x128xf32> to vector<32x128xbf16>
    %cst = arith.constant dense<0.000000e+00> : vector<8x128xf32>
    %4 = tpu.matmul %1, %3, %cst {dimension_numbers = #tpu.dot_dimension_numbers<[1], [0], [0], [1], [0, 0, 1, 1], [], []>} : vector<8x32xbf16>, vector<32x128xbf16>, vector<8x128xf32> -> vector<8x128xf32>
    %c0_3 = arith.constant 0 : index
    %c0_4 = arith.constant 0 : index
    %5 = vector.load %arg2[%c0_3, %c0_4] : memref<1x128xf32, #tpu.memory_space<vmem>>, vector<1x128xf32>
    %6 = vector.broadcast %5 : vector<1x128xf32> to vector<8x128xf32>
    %7 = arith.addf %4, %6 : vector<8x128xf32>
    %8 = arith.negf %7 : vector<8x128xf32>
    %9 = math.exp %8 : vector<8x128xf32>
    %cst_5 = arith.constant 1.000000e+00 : f32
    %10 = vector.broadcast %cst_5 : f32 to vector<8x128xf32>
    %11 = arith.addf %10, %9 : vector<8x128xf32>
    %12 = arith.divf %10, %11 : vector<8x128xf32>
    %13 = arith.mulf %7, %12 : vector<8x128xf32>
    %14 = arith.truncf %13 : vector<8x128xf32> to vector<8x128xbf16>
    %c0_6 = arith.constant 0 : index
    %c0_7 = arith.constant 0 : index
    %15 = vector.load %arg3[%c0_6, %c0_7] : memref<128x128xf32, #tpu.memory_space<vmem>>, vector<128x128xf32>
    %16 = arith.truncf %15 : vector<128x128xf32> to vector<128x128xbf16>
    %cst_8 = arith.constant dense<0.000000e+00> : vector<8x128xf32>
    %17 = tpu.matmul %14, %16, %cst_8 {dimension_numbers = #tpu.dot_dimension_numbers<[1], [0], [0], [1], [0, 0, 1, 1], [], []>} : vector<8x128xbf16>, vector<128x128xbf16>, vector<8x128xf32> -> vector<8x128xf32>
    %c0_9 = arith.constant 0 : index
    %c0_10 = arith.constant 0 : index
    %18 = vector.load %arg4[%c0_9, %c0_10] : memref<1x128xf32, #tpu.memory_space<vmem>>, vector<1x128xf32>
    %19 = vector.broadcast %18 : vector<1x128xf32> to vector<8x128xf32>
    %20 = arith.addf %17, %19 : vector<8x128xf32>
    %c0_11 = arith.constant 0 : index
    %c0_12 = arith.constant 0 : index
    %21 = vector.load %arg5[%c0_11, %c0_12] : memref<8x128xf32, #tpu.memory_space<vmem>>, vector<8x128xf32>
    tpu.vector_store %arg5[%c0_11, %c0_12], %20 {strides = array<i32>} : memref<8x128xf32, #tpu.memory_space<vmem>>, vector<8x128xf32>,
    return
  }
}

</mosaic_0001>

<bundles_post_ra>
// kernel: tpu_custom_call.1
= control target key start
LH: loop header
LB: loop body
LE: loop exit
PB: predicated region body
PF: predicated region fallthrough
CT: control target
= control target key end

     0   :  { %10 = vsyncpa [#allocation3], 0  ;;  %s464_s0 = inlined_call_operand.hbm [shape: f32[8,32], index: 0, kind: input, shape index: {}]   ;;  %s465_s1 = inlined_call_operand.hbm [shape: f32[32,128], index: 1, kind: input, shape index: {}]   ;;  %s466_s2 = inlined_call_operand.vmem [shape: f32[1,128], index: 2, kind: input, shape index: {}]   ;;  %s467_s3 = inlined_call_operand.hbm [shape: f32[128,128], index: 3, kind: input, shape index: {}]   ;;  %s468_s4 = inlined_call_operand.vmem [shape: f32[1,128], index: 4, kind: input, shape index: {}]   ;;  %s469_s5 = inlined_call_operand.hbm [shape: f32[8,128], index: 5, kind: output, shape index: {}]  }
   0x1   :  { %11 = vsyncpa [#allocation6], 0 }
   0x2   :  { %12 = vsyncpa [#allocation4], 0  ;;  %s366_s18 = smov [#allocation5]   ;;  %s272_s22 = scalar_lea.hbm %s465_s1, 512 }
   0x3   :  { %s28_s19 = sshll.u32 %s366_s18, 4  ;;  %p273_p0 = scmp.ne.s32.totalorder %s465_s1, %s272_s22  ;;  %s29_s19 = int_to_ptr.vmem [resolvable:$true] %s28_s19 }
   0x4   :  { %p276_p1 = scmp.lt.u32.totalorder %s272_s22, %s465_s1 }
   0x6   :  { %p278_p2 = pnand %p276_p1, %p273_p0 }
   0x8   :  { %281 = shalt.err (!%p278_p2)
}
   0x9   :  { %s282_s27 = scalar_lea.vmem %s29_s19, 512  ;;  %p287_p4 = scmp.lt.s32.totalorder %s29_s19, %s29_s19 }
   0xa   :  { %p283_p3 = scmp.ne.s32.totalorder %s29_s19, %s282_s27  ;;  %p288_p5 = scmp.lt.s32.totalorder %s282_s27, %s282_s27 }
   0xc   :  { %p289_p6 = por %p288_p5, %p287_p4 }
   0xe   :  { %p290_p7 = pnand %p289_p6, %p283_p3 }
  0x10   :  { %293 = shalt.err (!%p290_p7)
}
  0x11   :  { %s367_s28 = smov 128   ;;  %s368_s29 = smov 8  }
  0x12   :  { %34 = dma.hbm_to_vmem [thread:$0]  %s465_s1, 512, %s29_s19, [#allocation6], %s367_s28, %s367_s28, %s368_s29  }
  0x13   :  { %s369_s7 = smov [#allocation2]   ;;  %s370_s9 = smov [#allocation7]  }
  0x14   :  { %s19_s8 = sshll.u32 %s369_s7, 4  ;;  %s42_s10 = sshll.u32 %s370_s9, 4  ;;  %s20_s8 = int_to_ptr.vmem [resolvable:$true] %s19_s8  ;;  %s43_s10 = int_to_ptr.vmem [resolvable:$true] %s42_s10 }
  0x15   :  { %s294_s13 = scalar_lea.hbm %s464_s0, 128 }
  0x16   :  { %p295_p8 = scmp.ne.s32.totalorder %s464_s0, %s294_s13  ;;  %p298_p9 = scmp.lt.u32.totalorder %s294_s13, %s464_s0 }
  0x18   :  { %p300_p10 = pnand %p298_p9, %p295_p8 }
  0x1a   :  { %303 = shalt.err (!%p300_p10)
}
  0x1b   :  { %s304_s1 = scalar_lea.vmem %s20_s8, 128  ;;  %p309_p12 = scmp.lt.s32.totalorder %s20_s8, %s20_s8 }
  0x1c   :  { %p305_p11 = scmp.ne.s32.totalorder %s20_s8, %s304_s1  ;;  %p310_p13 = scmp.lt.s32.totalorder %s304_s1, %s304_s1 }
  0x1e   :  { %p311_p0 = por %p310_p13, %p309_p12 }
  0x20   :  { %p312_p1 = pnand %p311_p0, %p305_p11 }
  0x22   :  { %315 = shalt.err (!%p312_p1)
}
  0x23   :  { %22 = dma.hbm_to_vmem [thread:$0]  %s464_s0, 128, %s20_s8, [#allocation3]  }
  0x24   :  { %s316_s22 = scalar_lea.hbm %s467_s3, 2048 }
  0x25   :  { %p317_p2 = scmp.ne.s32.totalorder %s467_s3, %s316_s22  ;;  %p320_p3 = scmp.lt.u32.totalorder %s316_s22, %s467_s3 }
  0x27   :  { %p322_p4 = pnand %p320_p3, %p317_p2 }
  0x29   :  { %325 = shalt.err (!%p322_p4)
}
  0x2a   :  { %s326_s27 = scalar_lea.vmem %s43_s10, 2048  ;;  %p331_p6 = scmp.lt.s32.totalorder %s43_s10, %s43_s10 }
  0x2b   :  { %p327_p5 = scmp.ne.s32.totalorder %s43_s10, %s326_s27  ;;  %p332_p7 = scmp.lt.s32.totalorder %s326_s27, %s326_s27 }
  0x2d   :  { %p333_p8 = por %p332_p7, %p331_p6 }
  0x2f   :  { %p334_p9 = pnand %p333_p8, %p327_p5 }
  0x31   :  { %337 = shalt.err (!%p334_p9)
}
  0x32   :  { %48 = dma.hbm_to_vmem [thread:$0]  %s467_s3, 2048, %s43_s10, [#allocation6], %s367_s28, %s367_s28, %s368_s29  }
  0x33   :  { %360 = dma.done.wait [#allocation3], 128  }
  0x34   :  { %361 = vsyncadd [#allocation3], 4294967168 }
  0x35   :  { %362 = dma.done.wait [#allocation6], 2560  }
  0x36   :  { %363 = vsyncadd [#allocation6], 4294964736  ;;  %v371_v0 = vmov 0.0   ;;  %vm372_vm0 = vmmov 0   ;;  %v63_v1 = vld [vmem:[#allocation5] sm:$0xff]  ;;  %v64_v2 = vld [vmem:[#allocation5 + $0x8] sm:$0xff] }
  0x37   :  { %232 = vmatprep.subr.bf16.mxu0 %v371_v0  ;;  %236 = vmatprep.mubr.msk.bf16.mxu0 %vm372_vm0, %v371_v0  ;;  %v65_v3 = vld [vmem:[#allocation5 + $0x10] sm:$0xff]  ;;  %v67_v4 = vpack.c.bf16 %v64_v2, %v63_v1  ;;  %v66_v5 = vld [vmem:[#allocation5 + $0x18] sm:$0xff]  ;;  %vm76_vm1 = vcmask 261120   ;;  %v128_v9 = vld [vmem:[#allocation7] sm:$0xff]  ;;  %s373_s7 = smov [#allocation8]  }
  0x38   :  { %240 = vmatprep.subr.bf16.mxu1 %v371_v0  ;;  %256 = vmatprep.mubr.msk.bf16.mxu1 %vm372_vm0, %v371_v0  ;;  %v68_v6 = vpack.c.bf16 %v66_v5, %v65_v3  ;;  %v61_v7 = vld [vmem:[#allocation2] sm:$0xff]  ;;  %v129_v10 = vld [vmem:[#allocation7 + $0x8] sm:$0xff]  ;;  %v130_v12 = vld [vmem:[#allocation7 + $0x10] sm:$0xff] }
  0x39   :  { %233 = vmatpush3.bf16.msra.mxu0 %v67_v4  ;;  %v62_v8 = vpack.c.bf16 %v61_v7, %v61_v7  ;;  %v144_v11 = vpack.c.bf16 %v129_v10, %v128_v9  ;;  %v131_v13 = vld [vmem:[#allocation7 + $0x18] sm:$0xff]  ;;  %v132_v15 = vld [vmem:[#allocation7 + $0x20] sm:$0xff]  ;;  %v133_v16 = vld [vmem:[#allocation7 + $0x28] sm:$0xff] }
  0x3a   :  { %234 = vmatprep.subr.bf16.mxu0 %v371_v0  ;;  %v145_v14 = vpack.c.bf16 %v131_v13, %v130_v12  ;;  %v146_v17 = vpack.c.bf16 %v133_v16, %v132_v15  ;;  %v134_v18 = vld [vmem:[#allocation7 + $0x30] sm:$0xff]  ;;  %v135_v19 = vld [vmem:[#allocation7 + $0x38] sm:$0xff]  ;;  %v136_v21 = vld [vmem:[#allocation7 + $0x40] sm:$0xff] }
  0x3b   :  { %241 = vmatpush3.bf16.msra.mxu1 %v144_v11  ;;  %v147_v20 = vpack.c.bf16 %v135_v19, %v134_v18  ;;  %v137_v22 = vld [vmem:[#allocation7 + $0x48] sm:$0xff]  ;;  %v138_v24 = vld [vmem:[#allocation7 + $0x50] sm:$0xff]  ;;  %v139_v25 = vld [vmem:[#allocation7 + $0x58] sm:$0xff] }
  0x3c   :  { %242 = vmatprep.subr.bf16.mxu1 %v371_v0  ;;  %v148_v23 = vpack.c.bf16 %v137_v22, %v136_v21  ;;  %v149_v26 = vpack.c.bf16 %v139_v25, %v138_v24  ;;  %v140_v27 = vld [vmem:[#allocation7 + $0x60] sm:$0xff]  ;;  %v141_v28 = vld [vmem:[#allocation7 + $0x68] sm:$0xff]  ;;  %v142_v30 = vld [vmem:[#allocation7 + $0x70] sm:$0xff] }
  0x3d   :  { %235 = vmatpush3.bf16.msra.mxu0 %v68_v6  ;;  %v150_v29 = vpack.c.bf16 %v141_v28, %v140_v27  ;;  %v143_v31 = vld [vmem:[#allocation7 + $0x78] sm:$0xff] }
  0x3e   :  { %v151_v32 = vpack.c.bf16 %v143_v31, %v142_v30  ;;  %v216_v33 = vld [vmem:[%s466_s2] ss:$0 sm:$0xff]  ;;  %s206_s2 = sshll.u32 %s373_s7, 4  ;;  %s207_s2 = int_to_ptr.vmem [resolvable:$true] %s206_s2 }
  0x3f   :  { %243 = vmatpush3.bf16.msra.mxu1 %v145_v14  ;;  %v219_v45 = vld [vmem:[%s468_s4] ss:$0 sm:$0xff]  ;;  %s338_s8 = scalar_lea.vmem %s207_s2, 128  ;;  %p343_p11 = scmp.lt.s32.totalorder %s207_s2, %s207_s2 }
  0x40   :  { %237 = vmatmul.mubr.msk.bf16.vlgmr.msra.gmra.mrb[0].mxu0 %vm76_vm1, %v62_v8  ;;  %244 = vmatprep.subr.bf16.mxu1 %v371_v0  ;;  %p339_p10 = scmp.ne.s32.totalorder %s207_s2, %s338_s8  ;;  %p344_p12 = scmp.lt.s32.totalorder %s338_s8, %s338_s8 }
  0x42   :  { %p345_p13 = por %p344_p12, %p343_p11 }
  0x43   :  { %245 = vmatpush3.bf16.msra.mxu1 %v146_v17 }
  0x44   :  { %246 = vmatprep.subr.bf16.mxu1 %v371_v0  ;;  %p346_p0 = pnand %p345_p13, %p339_p10 }
  0x47   :  { %247 = vmatpush3.bf16.msra.mxu1 %v147_v20 }
  0x48   :  { %248 = vmatprep.subr.bf16.mxu1 %v371_v0 }
  0x4b   :  { %249 = vmatpush3.bf16.msra.mxu1 %v148_v23 }
  0x4c   :  { %250 = vmatprep.subr.bf16.mxu1 %v371_v0 }
  0x4f   :  { %251 = vmatpush3.bf16.msra.mxu1 %v149_v26 }
  0x50   :  { %252 = vmatprep.subr.bf16.mxu1 %v371_v0 }
  0x53   :  { %253 = vmatpush3.bf16.msra.mxu1 %v150_v29 }
  0x54   :  { %254 = vmatprep.subr.bf16.mxu1 %v371_v0 }
  0x57   :  { %255 = vmatpush3.bf16.msra.mxu1 %v151_v32 }
 0x113   :  { %v114_v34 = vpop.f32.mrb[0].mxu0 }
 0x114   :  { %v115_v35 = vadd.f32 %v216_v33, %v114_v34  ;;  %v238_v36 = vpop.f32.mrb[1].mxu0 }
 0x115   :  { %v117_v37 = vpop.f32.mrb[2].mxu0 }
 0x116   :  { %v218_v38 = vmul.f32 -1.442695, %v115_v35  ;;  %v239_v39 = vpop.f32.mrb[3].mxu0 }
 0x118   :  { %268 = vpow2.f32 %v218_v38 }
 0x122   :  { %v269_v40 = vpop.eup %268 }
 0x123   :  { %v123_v41 = vadd.f32 1.0, %v269_v40 }
 0x125   :  { %270 = vrcp.f32 %v123_v41 }
 0x12f   :  { %v271_v42 = vpop.eup %270 }
 0x130   :  { %v126_v43 = vmul.f32 %v271_v42, %v115_v35 }
 0x132   :  { %v127_v44 = vpack.c.bf16 %v126_v43, %v126_v43 }
 0x134   :  { %257 = vmatmul.mubr.bf16.vlgmr.msra.gmra.mrb[0].mxu1 %v127_v44 }
 0x207   :  { %v193_v46 = vpop.f32.mrb[0].mxu1 }
 0x208   :  { %v194_v47 = vadd.f32 %v219_v45, %v193_v46  ;;  %v258_v48 = vpop.f32.mrb[1].mxu1 }
 0x209   :  { %v196_v49 = vpop.f32.mrb[2].mxu1 }
 0x20a   :  { %199 = vst [vmem:[#allocation8] sm:$0xff] %v194_v47  ;;  %v259_v50 = vpop.f32.mrb[3].mxu1 }
 0x20b   :  { %349 = shalt.err (!%p346_p0)
}
 0x20c   :  { %s350_s4 = scalar_lea.hbm %s469_s5, 128 }
 0x20d   :  { %p351_p1 = scmp.ne.s32.totalorder %s469_s5, %s350_s4  ;;  %p354_p2 = scmp.lt.u32.totalorder %s350_s4, %s469_s5 }
 0x20f   :  { %p356_p3 = pnand %p354_p2, %p351_p1 }
 0x211   :  { %359 = shalt.err (!%p356_p3)
}
 0x212   :  { %209 = dma.vmem_to_hbm [thread:$0]  %s207_s2, 128, %s469_s5, [#allocation4]  }
 0x213   :  { %364 = dma.done.wait [#allocation4], 128  }
 0x214   :  { %365 = vsyncadd [#allocation4], 4294967168 }
 0x215   :  { %213 = vsyncpa [#allocation3], 1 }
 0x216   :  { %214 = vsyncpa [#allocation6], 1 }
 0x217   :  { %215 = vsyncpa [#allocation4], 1 }

</bundles_post_ra>
